<compile_context>
chip_gen: v6e
topology: v6e:2x2x1
jax: 0.10.0
libtpu: 0.0.40
codegen_flags: <defaults>
</compile_context>

<pallas_src>
import functools
import math

import jax
import jax.numpy as jnp
from jax.experimental import pallas as pl
from jax.experimental.pallas import tpu as pltpu


LANE = 128
SUBLANE = 8

_PARAM_KEYS = ("w4", "b4", "w3", "b3", "w2", "b2", "w1", "b1")


def _round_up(n, m):
    return ((n + m - 1) // m) * m


def _pad_to_lane(n):
    return _round_up(n, LANE)


# ----------------------------------------------------------------------------
# Generation-aware hardware budget.
# ----------------------------------------------------------------------------
def _tpu_generation():
    """Best-effort TPU generation query -> (vmem_budget_bytes, tc_per_chip).

    Budgets leave headroom under physical VMEM (64 MiB/TC on v7x, 128 MiB on
    v5e/v6e) for compiler-internal scratch.
    """
    try:
        kind = jax.devices()[0].device_kind.lower()
    except Exception:
        kind = ""
    if "v7" in kind:
        return 44 << 20, 2        # 64 MiB per TC physical, 2 TCs share the chip
    if "v6" in kind:
        return 100 << 20, 1       # 128 MiB physical
    if "v5p" in kind or "v4" in kind:
        return 100 << 20, 2       # megacore: two TCs behind one device
    if "v5" in kind:              # v5e / "v5 lite"
        return 100 << 20, 1
    return 48 << 20, 1            # unknown generation: be conservative


# ----------------------------------------------------------------------------
# Pallas kernel: fused 4-layer MLP (fc4 -> fc3 -> fc2 -> fc1), relu between
# layers, optional sigmoid.  One batch tile per grid step; weights/biases are
# VMEM-resident for the whole grid.
# ----------------------------------------------------------------------------
def _generator_kernel(z_ref,
                      w4_ref, b4_ref,
                      w3_ref, b3_ref,
                      w2_ref, b2_ref,
                      w1_ref, b1_ref,
                      o_ref,
                      *, use_sigmoid: bool):
    # fc4: (B, in4) @ (in4, p3) -> f32 accum, f32 bias, relu.
    h = jnp.dot(z_ref[...], w4_ref[...], preferred_element_type=jnp.float32)
    h = jnp.maximum(h + b4_ref[...], 0.0)

    # fc3 (cast activations to the weight dtype so bf16 weights use the
    # bf16-native MXU path on every generation; no-op for f32 weights).
    h = jnp.dot(h.astype(w3_ref.dtype), w3_ref[...],
                preferred_element_type=jnp.float32)
    h = jnp.maximum(h + b3_ref[...], 0.0)

    # fc2.
    h = jnp.dot(h.astype(w2_ref.dtype), w2_ref[...],
                preferred_element_type=jnp.float32)
    h = jnp.maximum(h + b2_ref[...], 0.0)

    # fc1 (no relu).
    h = jnp.dot(h.astype(w1_ref.dtype), w1_ref[...],
                preferred_element_type=jnp.float32)
    h = h + b1_ref[...]

    if use_sigmoid:
        h = jax.nn.sigmoid(h)     # EUP-slot work, effectively free

    o_ref[...] = h.astype(o_ref.dtype)


# ----------------------------------------------------------------------------
# One-time kernel-parameter preparation (transpose + zero padding).
# ----------------------------------------------------------------------------
def prepare_kernel_params(raw, compute_dtype=jnp.float32, pad_output=False):
    """raw: PyTorch-convention effective params (wN: (out,in), bN: (out,)).

    Weights are transposed to (in, out); hidden output dims are zero-padded to
    multiples of 128 (and each layer's input dim padded to match the previous
    layer's padded output), then cast to `compute_dtype` (f32 or bf16 -- bf16
    is a valid MXU fast path on v5e/v6e/v7x).  Biases stay f32 as (1, out).
    The final layer's output dim stays at x_dim unless pad_output=True (in
    which case the caller receives a lane-dense padded output and must slice).
    """
    out4, in4 = raw["w4"].shape        # (h_dim3, h_dim4)
    out3 = raw["w3"].shape[0]          # h_dim2
    out2 = raw["w2"].shape[0]          # h_dim1
    out1 = raw["w1"].shape[0]          # x_dim

    p4o = _pad_to_lane(out4)
    p3o = _pad_to_lane(out3)
    p2o = _pad_to_lane(out2)
    p1o = _pad_to_lane(out1) if pad_output else out1

    def prep_w(w, pad_in, pad_out):
        wt = jnp.asarray(w, jnp.float32).T                     # (in, out)
        wt = jnp.pad(wt, ((0, pad_in - wt.shape[0]),
                          (0, pad_out - wt.shape[1])))
        return wt.astype(compute_dtype)

    def prep_b(b, pad_out):
        b = jnp.asarray(b, jnp.float32).reshape(1, -1)
        return jnp.pad(b, ((0, 0), (0, pad_out - b.shape[1])))  # stays f32

    return {
        "w4": prep_w(raw["w4"], in4, p4o), "b4": prep_b(raw["b4"], p4o),
        "w3": prep_w(raw["w3"], p4o, p3o), "b3": prep_b(raw["b3"], p3o),
        "w2": prep_w(raw["w2"], p3o, p2o), "b2": prep_b(raw["b2"], p2o),
        "w1": prep_w(raw["w1"], p2o, p1o), "b1": prep_b(raw["b1"], p1o),
        "x_dim": out1,
        "z_dim": in4,
        "out_width": p1o,
    }


# ----------------------------------------------------------------------------
# VMEM-budgeted tile selection (generation aware).
# ----------------------------------------------------------------------------
def _vmem_array_bytes(shape, dtype):
    r, c = shape
    itemsize = jnp.dtype(dtype).itemsize
    sub = SUBLANE * max(1, 4 // itemsize)          # sublane packing of narrow dtypes
    return _round_up(r, sub) * _round_up(c, LANE) * itemsize


def _vmem_budget_plan(kp, z_dim, out_width, out_dtype, batch):
    vmem_budget, num_tc = _tpu_generation()
    csize = jnp.dtype(kp["w4"].dtype).itemsize
    osize = jnp.dtype(out_dtype).itemsize

    # Resident params.  x2 margin also covers the blocked fallback path, which
    # may allocate the default two pipeline buffers per operand.
    fixed = 2 * sum(_vmem_array_bytes(kp[k].shape, kp[k].dtype)
                    for k in _PARAM_KEYS)

    # Per-batch-row VMEM cost of one grid step: double-buffered z/out tiles
    # plus the chained f32 intermediates (and their compute-dtype casts), with
    # 2x slack for compiler temporaries.
    widths = [kp["w4"].shape[1], kp["w3"].shape[1], kp["w2"].shape[1],
              _round_up(out_width, LANE)]
    per_row = (2 * _round_up(z_dim, LANE) * csize
               + 2 * _round_up(out_width, LANE) * osize
               + 2 * sum(widths) * (4 + csize))

    if batch <= SUBLANE:
        tile_b = batch
    else:
        avail = max(vmem_budget - fixed - (2 << 20), SUBLANE * per_row)
        cap = min(2048,
                  (avail // per_row) // SUBLANE * SUBLANE,
                  _round_up(batch, SUBLANE))
        if num_tc > 1 and batch >= 2 * SUBLANE:
            # Guarantee >= num_tc grid steps so the "parallel" batch axis can
            # actually be sharded across TensorCores (v7x / megacore).
            cap = min(cap, _round_up(pl.cdiv(batch, num_tc), SUBLANE))
        tile_b = SUBLANE
        for t in (2048, 1024, 512, 256, 128, 64, 32, 16, 8):
            if t <= cap:
                tile_b = t
                break

    needed = fixed + tile_b * per_row + (2 << 20)
    vmem_limit = int(min(vmem_budget, max(2 * needed, 32 << 20)))
    return tile_b, vmem_limit


# ----------------------------------------------------------------------------
# Forward wrapper.
# ----------------------------------------------------------------------------
def generator_forward(z, kp, *, use_sigmoid: bool, out_dtype=jnp.float32):
    batch, z_dim = z.shape
    assert z_dim == kp["z_dim"], "z feature dim mismatch"
    out_w = kp["out_width"]

    compute_dtype = kp["w4"].dtype
    z = z.astype(compute_dtype)

    tile_b, vmem_limit = _vmem_budget_plan(kp, z_dim, out_w, out_dtype, batch)
    # Non-divisible batches get a masked partial last tile (OOB output rows are
    # discarded by Pallas; MLP rows are independent so garbage pad rows are
    # harmless) -- no monolithic single-block fallback, no wrapper pad/slice.
    grid = (pl.cdiv(batch, tile_b),)

    # Advisory cost estimate so XLA schedules around the custom call.
    flops = 2 * batch * sum(kp[k].shape[0] * kp[k].shape[1]
                            for k in ("w4", "w3", "w2", "w1"))
    param_bytes = sum(int(kp[k].size) * jnp.dtype(kp[k].dtype).itemsize
                      for k in _PARAM_KEYS)
    cost = pl.CostEstimate(
        flops=int(flops),
        transcendentals=int(batch * out_w) if use_sigmoid else 0,
        bytes_accessed=int(int(z.size) * z.dtype.itemsize + param_bytes
                           + batch * out_w * jnp.dtype(out_dtype).itemsize),
    )

    kernel = functools.partial(_generator_kernel, use_sigmoid=use_sigmoid)
    row_map = lambda i: (i, 0)        # z / out tiles advance with the batch axis

    def build(resident_unblocked):
        if resident_unblocked:
            # Whole array staged once in VMEM, single-buffered (no per-step DMA,
            # half the resident footprint of the default double-buffered path).
            def resident(k):
                return pl.BlockSpec(memory_space=pltpu.MemorySpace.VMEM)
        else:
            # Known-good fallback: full-extent block, constant index_map
            # (revisited block => no redundant DMA, but default buffering).
            def resident(k):
                return pl.BlockSpec(kp[k].shape, lambda i: (0, 0))

        in_specs = ([pl.BlockSpec((tile_b, z_dim), row_map)]
                    + [resident(k) for k in _PARAM_KEYS])
        out_spec = pl.BlockSpec((tile_b, out_w), row_map)

        return pl.pallas_call(
            kernel,
            out_shape=jax.ShapeDtypeStruct((batch, out_w), out_dtype),
            grid=grid,
            in_specs=in_specs,
            out_specs=out_spec,
            compiler_params=pltpu.CompilerParams(
                dimension_semantics=("parallel",),   # shards batch on dual-TC parts
                vmem_limit_bytes=vmem_limit),
            cost_estimate=cost,
        )

    args = (z,) + tuple(kp[k] for k in _PARAM_KEYS)
    try:
        return build(True)(*args)
    except Exception:
        # If the installed jax rejects unblocked VMEM operands with a grid,
        # fall back to the blocked constant-index-map form (same semantics).
        return build(False)(*args)


# ----------------------------------------------------------------------------
# Supermask (Get_SVS2_subnet) mask construction -- plain JAX (param prep only).
# ----------------------------------------------------------------------------
def svs2_subnet_mask(scores_abs, var_sparsity, global_sparsity):
    """Reproduces Get_SVS2_subnet.forward on |scores|:
       k = 1 - tanh(global_sparsity * var_sparsity**2)
       zero the smallest j = int((1-k)*numel) entries, set the rest to 1.
       (Matches torch exactly when |scores| has no ties.)"""
    k = 1.0 - math.tanh(float(global_sparsity) * float(var_sparsity) ** 2)
    n = scores_abs.size
    j = int((1.0 - k) * n)
    flat = scores_abs.reshape(-1)
    order = jnp.argsort(flat)                # ascending, like torch .sort()
    ranks = jnp.argsort(order)               # rank of each element
    mask_flat = (ranks >= j).astype(scores_abs.dtype)
    return mask_flat.reshape(scores_abs.shape)


# ----------------------------------------------------------------------------
# Deterministic parameter construction (mirrors the module's __init__ shapes),
# PyTorch convention: wN is (out, in), bN is (out,).
# ----------------------------------------------------------------------------
def _kaiming_normal_fan_in(key, out_dim, in_dim):
    std = math.sqrt(2.0 / in_dim)             # relu gain, fan_in mode
    return std * jax.random.normal(key, (out_dim, in_dim), dtype=jnp.float32)


def _kaiming_uniform_a_sqrt5(key, out_dim, in_dim):
    gain = math.sqrt(2.0 / (1.0 + 5.0))       # a = sqrt(5)
    bound = gain * math.sqrt(3.0 / in_dim)
    return jax.random.uniform(key, (out_dim, in_dim), dtype=jnp.float32,
                              minval=-bound, maxval=bound)


def build_generator_params(key, x_dim, h_dim1, h_dim2, h_dim3, h_dim4,
                           weights_to_prune, sparsity_ratios, global_sparsity,
                           index):
    layer_dims = {
        "4": (h_dim3, h_dim4),   # fc4: h_dim4 -> h_dim3  (prune id '5')
        "3": (h_dim2, h_dim3),   # fc3: h_dim3 -> h_dim2  (prune id '6')
        "2": (h_dim1, h_dim2),   # fc2: h_dim2 -> h_dim1  (prune id '7')
        "1": (x_dim, h_dim1),    # fc1: h_dim1 -> x_dim   (prune id '8')
    }
    prune_id = {"4": "5", "3": "6", "2": "7", "1": "8"}

    params = {}
    keys = jax.random.split(key, 12)
    ki = 0
    for name in ("4", "3", "2", "1"):
        out_d, in_d = layer_dims[name]
        w = _kaiming_normal_fan_in(keys[ki], out_d, in_d); ki += 1
        bound = 1.0 / math.sqrt(in_d)
        b = jax.random.uniform(keys[ki], (out_d,), dtype=jnp.float32,
                               minval=-bound, maxval=bound); ki += 1
        if prune_id[name] in weights_to_prune:
            scores = _kaiming_uniform_a_sqrt5(keys[ki], out_d, in_d); ki += 1
            var_sparsity = sparsity_ratios[index[prune_id[name]]]
            mask = svs2_subnet_mask(jnp.abs(scores), var_sparsity,
                                    global_sparsity)
            w = w * mask
        params[f"w{name}"] = w
        params[f"b{name}"] = b
    return params


# ----------------------------------------------------------------------------
# Pure-JAX reference for a sanity check (PyTorch-convention params).
# ----------------------------------------------------------------------------
def generator_forward_ref(z, raw, *, use_sigmoid):
    h = jnp.maximum(z @ raw["w4"].T + raw["b4"], 0.0)
    h = jnp.maximum(h @ raw["w3"].T + raw["b3"], 0.0)
    h = jnp.maximum(h @ raw["w2"].T + raw["b2"], 0.0)
    h = h @ raw["w1"].T + raw["b1"]
    if use_sigmoid:
        h = jax.nn.sigmoid(h)
    return h


if __name__ == "__main__":
    # Small shapes consistent with the module: z has h_dim4 features, output x_dim.
    batch, x_dim, h_dim1, h_dim2, h_dim3, h_dim4 = 8, 32, 64, 48, 40, 16

    weights_to_prune = ["6", "8"]             # fc3 and fc1 get supermasks
    sparsity_ratios = {"l6": 0.5, "l8": 0.7}
    index = {"6": "l6", "8": "l8"}
    global_sparsity = 2.0
    use_sigmoid = True

    key = jax.random.PRNGKey(0)
    k_params, k_z, k_z2 = jax.random.split(key, 3)

    raw = build_generator_params(k_params, x_dim, h_dim1, h_dim2, h_dim3,
                                 h_dim4, weights_to_prune, sparsity_ratios,
                                 global_sparsity, index)
    z = jax.random.normal(k_z, (batch, h_dim4), dtype=jnp.float32)

    ref = generator_forward_ref(z, raw, use_sigmoid=use_sigmoid)

    # f32 MXU path (numerically faithful; zero padding is exact), direct x_dim
    # output -- no post-kernel slice.
    kp_f32 = prepare_kernel_params(raw, compute_dtype=jnp.float32)
    out_f32 = jax.block_until_ready(
        generator_forward(z, kp_f32, use_sigmoid=use_sigmoid))
    assert out_f32.shape == (batch, x_dim)
    assert jnp.allclose(out_f32, ref, atol=1e-4, rtol=1e-4)

    # Non-divisible batch exercises the cdiv grid with a masked partial tile.
    batch2 = 24
    z2 = jax.random.normal(k_z2, (batch2, h_dim4), dtype=jnp.float32)
    ref2 = generator_forward_ref(z2, raw, use_sigmoid=use_sigmoid)
    out2 = jax.block_until_ready(
        generator_forward(z2, kp_f32, use_sigmoid=use_sigmoid))
    assert out2.shape == (batch2, x_dim)
    assert jnp.allclose(out2, ref2, atol=1e-4, rtol=1e-4)

    # bf16 weight fast path (valid on v5e/v6e/v7x), bf16 output store.
    kp_bf16 = prepare_kernel_params(raw, compute_dtype=jnp.bfloat16)
    out_bf16 = jax.block_until_ready(
        generator_forward(z, kp_bf16, use_sigmoid=use_sigmoid,
                          out_dtype=jnp.bfloat16))
    assert out_bf16.shape == (batch, x_dim)
    assert jnp.allclose(out_bf16.astype(jnp.float32), ref, atol=1e-1, rtol=1e-1)

    print("KERNEL_OK")
</pallas_src>

<mosaic_0001>
module attributes {stable_mosaic.version = 11 : i64} {
  func.func @_generator_kernel(%arg0: i32, %arg1: memref<8x16xf32, #tpu.memory_space<vmem>>, %arg2: memref<16x128xf32, #tpu.memory_space<vmem>>, %arg3: memref<1x128xf32, #tpu.memory_space<vmem>>, %arg4: memref<128x128xf32, #tpu.memory_space<vmem>>, %arg5: memref<1x128xf32, #tpu.memory_space<vmem>>, %arg6: memref<128x128xf32, #tpu.memory_space<vmem>>, %arg7: memref<1x128xf32, #tpu.memory_space<vmem>>, %arg8: memref<128x32xf32, #tpu.memory_space<vmem>>, %arg9: memref<1x32xf32, #tpu.memory_space<vmem>>, %arg10: memref<8x32xf32, #tpu.memory_space<vmem>>) attributes {dimension_semantics = [#tpu.dimension_semantics<parallel>], iteration_bounds = array<i64: 1>, scalar_prefetch = 0 : i64, scratch_operands = 0 : i64, tpu.core_type = #tpu.core_type<tc>, window_params = [{transform_indices = @transform_0, window_bounds = array<i64: 8, 16>}, {pipeline_mode = #tpu.pipeline_mode<synchronous>, transform_indices = @transform_1, window_bounds = array<i64: 16, 128>}, {pipeline_mode = #tpu.pipeline_mode<synchronous>, transform_indices = @transform_2, window_bounds = array<i64: 1, 128>}, {pipeline_mode = #tpu.pipeline_mode<synchronous>, transform_indices = @transform_3, window_bounds = array<i64: 128, 128>}, {pipeline_mode = #tpu.pipeline_mode<synchronous>, transform_indices = @transform_4, window_bounds = array<i64: 1, 128>}, {pipeline_mode = #tpu.pipeline_mode<synchronous>, transform_indices = @transform_5, window_bounds = array<i64: 128, 128>}, {pipeline_mode = #tpu.pipeline_mode<synchronous>, transform_indices = @transform_6, window_bounds = array<i64: 1, 128>}, {pipeline_mode = #tpu.pipeline_mode<synchronous>, transform_indices = @transform_7, window_bounds = array<i64: 128, 32>}, {pipeline_mode = #tpu.pipeline_mode<synchronous>, transform_indices = @transform_8, window_bounds = array<i64: 1, 32>}, {transform_indices = @transform_9, window_bounds = array<i64: 8, 32>}]} {
    %c0 = arith.constant 0 : index
    %c0_0 = arith.constant 0 : index
    %0 = vector.load %arg1[%c0, %c0_0] : memref<8x16xf32, #tpu.memory_space<vmem>>, vector<8x16xf32>
    %c0_1 = arith.constant 0 : index
    %c0_2 = arith.constant 0 : index
    %1 = vector.load %arg2[%c0_1, %c0_2] : memref<16x128xf32, #tpu.memory_space<vmem>>, vector<16x128xf32>
    %cst = arith.constant dense<0.000000e+00> : vector<8x128xf32>
    %2 = tpu.matmul %0, %1, %cst {dimension_numbers = #tpu.dot_dimension_numbers<[1], [0], [0], [1], [0, 0, 1, 1], [], []>} : vector<8x16xf32>, vector<16x128xf32>, vector<8x128xf32> -> vector<8x128xf32>
    %c0_3 = arith.constant 0 : index
    %c0_4 = arith.constant 0 : index
    %3 = vector.load %arg3[%c0_3, %c0_4] : memref<1x128xf32, #tpu.memory_space<vmem>>, vector<1x128xf32>
    %4 = vector.broadcast %3 : vector<1x128xf32> to vector<8x128xf32>
    %5 = arith.addf %2, %4 : vector<8x128xf32>
    %cst_5 = arith.constant 0.000000e+00 : f32
    %6 = vector.broadcast %cst_5 : f32 to vector<8x128xf32>
    %7 = arith.maximumf %5, %6 : vector<8x128xf32>
    %c0_6 = arith.constant 0 : index
    %c0_7 = arith.constant 0 : index
    %8 = vector.load %arg4[%c0_6, %c0_7] : memref<128x128xf32, #tpu.memory_space<vmem>>, vector<128x128xf32>
    %cst_8 = arith.constant dense<0.000000e+00> : vector<8x128xf32>
    %9 = tpu.matmul %7, %8, %cst_8 {dimension_numbers = #tpu.dot_dimension_numbers<[1], [0], [0], [1], [0, 0, 1, 1], [], []>} : vector<8x128xf32>, vector<128x128xf32>, vector<8x128xf32> -> vector<8x128xf32>
    %c0_9 = arith.constant 0 : index
    %c0_10 = arith.constant 0 : index
    %10 = vector.load %arg5[%c0_9, %c0_10] : memref<1x128xf32, #tpu.memory_space<vmem>>, vector<1x128xf32>
    %11 = vector.broadcast %10 : vector<1x128xf32> to vector<8x128xf32>
    %12 = arith.addf %9, %11 : vector<8x128xf32>
    %cst_11 = arith.constant 0.000000e+00 : f32
    %13 = vector.broadcast %cst_11 : f32 to vector<8x128xf32>
    %14 = arith.maximumf %12, %13 : vector<8x128xf32>
    %c0_12 = arith.constant 0 : index
    %c0_13 = arith.constant 0 : index
    %15 = vector.load %arg6[%c0_12, %c0_13] : memref<128x128xf32, #tpu.memory_space<vmem>>, vector<128x128xf32>
    %cst_14 = arith.constant dense<0.000000e+00> : vector<8x128xf32>
    %16 = tpu.matmul %14, %15, %cst_14 {dimension_numbers = #tpu.dot_dimension_numbers<[1], [0], [0], [1], [0, 0, 1, 1], [], []>} : vector<8x128xf32>, vector<128x128xf32>, vector<8x128xf32> -> vector<8x128xf32>
    %c0_15 = arith.constant 0 : index
    %c0_16 = arith.constant 0 : index
    %17 = vector.load %arg7[%c0_15, %c0_16] : memref<1x128xf32, #tpu.memory_space<vmem>>, vector<1x128xf32>
    %18 = vector.broadcast %17 : vector<1x128xf32> to vector<8x128xf32>
    %19 = arith.addf %16, %18 : vector<8x128xf32>
    %cst_17 = arith.constant 0.000000e+00 : f32
    %20 = vector.broadcast %cst_17 : f32 to vector<8x128xf32>
    %21 = arith.maximumf %19, %20 : vector<8x128xf32>
    %c0_18 = arith.constant 0 : index
    %c0_19 = arith.constant 0 : index
    %22 = vector.load %arg8[%c0_18, %c0_19] : memref<128x32xf32, #tpu.memory_space<vmem>>, vector<128x32xf32>
    %cst_20 = arith.constant dense<0.000000e+00> : vector<8x32xf32>
    %23 = tpu.matmul %21, %22, %cst_20 {dimension_numbers = #tpu.dot_dimension_numbers<[1], [0], [0], [1], [0, 0, 1, 1], [], []>} : vector<8x128xf32>, vector<128x32xf32>, vector<8x32xf32> -> vector<8x32xf32>
    %c0_21 = arith.constant 0 : index
    %c0_22 = arith.constant 0 : index
    %24 = vector.load %arg9[%c0_21, %c0_22] : memref<1x32xf32, #tpu.memory_space<vmem>>, vector<1x32xf32>
    %25 = vector.broadcast %24 : vector<1x32xf32> to vector<8x32xf32>
    %26 = arith.addf %23, %25 : vector<8x32xf32>
    %27 = arith.negf %26 : vector<8x32xf32>
    %28 = math.exp %27 : vector<8x32xf32>
    %cst_23 = arith.constant 1.000000e+00 : f32
    %29 = vector.broadcast %cst_23 : f32 to vector<8x32xf32>
    %30 = arith.addf %29, %28 : vector<8x32xf32>
    %31 = arith.divf %29, %30 : vector<8x32xf32>
    %c0_24 = arith.constant 0 : index
    %c0_25 = arith.constant 0 : index
    %32 = vector.load %arg10[%c0_24, %c0_25] : memref<8x32xf32, #tpu.memory_space<vmem>>, vector<8x32xf32>
    tpu.vector_store %arg10[%c0_24, %c0_25], %31 {strides = array<i32>} : memref<8x32xf32, #tpu.memory_space<vmem>>, vector<8x32xf32>,
    return
  }
  func.func @transform_0(%arg0: i32) -> (i32, i32) {
    %c0_i32 = arith.constant 0 : i32
    %c0_i32_0 = arith.constant 0 : i32
    return %arg0, %c0_i32 : i32, i32
  }
  func.func @transform_1(%arg0: i32) -> (i32, i32) {
    %c0_i32 = arith.constant 0 : i32
    %c0_i32_0 = arith.constant 0 : i32
    %c0_i32_1 = arith.constant 0 : i32
    return %c0_i32, %c0_i32_0 : i32, i32
  }
  func.func @transform_2(%arg0: i32) -> (i32, i32) {
    %c0_i32 = arith.constant 0 : i32
    %c0_i32_0 = arith.constant 0 : i32
    %c0_i32_1 = arith.constant 0 : i32
    return %c0_i32, %c0_i32_0 : i32, i32
  }
  func.func @transform_3(%arg0: i32) -> (i32, i32) {
    %c0_i32 = arith.constant 0 : i32
    %c0_i32_0 = arith.constant 0 : i32
    %c0_i32_1 = arith.constant 0 : i32
    return %c0_i32, %c0_i32_0 : i32, i32
  }
  func.func @transform_4(%arg0: i32) -> (i32, i32) {
    %c0_i32 = arith.constant 0 : i32
    %c0_i32_0 = arith.constant 0 : i32
    %c0_i32_1 = arith.constant 0 : i32
    return %c0_i32, %c0_i32_0 : i32, i32
  }
  func.func @transform_5(%arg0: i32) -> (i32, i32) {
    %c0_i32 = arith.constant 0 : i32
    %c0_i32_0 = arith.constant 0 : i32
    %c0_i32_1 = arith.constant 0 : i32
    return %c0_i32, %c0_i32_0 : i32, i32
  }
  func.func @transform_6(%arg0: i32) -> (i32, i32) {
    %c0_i32 = arith.constant 0 : i32
    %c0_i32_0 = arith.constant 0 : i32
    %c0_i32_1 = arith.constant 0 : i32
    return %c0_i32, %c0_i32_0 : i32, i32
  }
  func.func @transform_7(%arg0: i32) -> (i32, i32) {
    %c0_i32 = arith.constant 0 : i32
    %c0_i32_0 = arith.constant 0 : i32
    %c0_i32_1 = arith.constant 0 : i32
    return %c0_i32, %c0_i32_0 : i32, i32
  }
  func.func @transform_8(%arg0: i32) -> (i32, i32) {
    %c0_i32 = arith.constant 0 : i32
    %c0_i32_0 = arith.constant 0 : i32
    %c0_i32_1 = arith.constant 0 : i32
    return %c0_i32, %c0_i32_0 : i32, i32
  }
  func.func @transform_9(%arg0: i32) -> (i32, i32) {
    %c0_i32 = arith.constant 0 : i32
    %c0_i32_0 = arith.constant 0 : i32
    return %arg0, %c0_i32 : i32, i32
  }
}

module attributes {stable_mosaic.version = 11 : i64} {
  func.func @_generator_kernel(%arg0: i32, %arg1: memref<8x16xf32, #tpu.memory_space<vmem>>, %arg2: memref<16x128xf32, #tpu.memory_space<vmem>>, %arg3: memref<1x128xf32, #tpu.memory_space<vmem>>, %arg4: memref<128x128xf32, #tpu.memory_space<vmem>>, %arg5: memref<1x128xf32, #tpu.memory_space<vmem>>, %arg6: memref<128x128xf32, #tpu.memory_space<vmem>>, %arg7: memref<1x128xf32, #tpu.memory_space<vmem>>, %arg8: memref<128x32xf32, #tpu.memory_space<vmem>>, %arg9: memref<1x32xf32, #tpu.memory_space<vmem>>, %arg10: memref<8x32xf32, #tpu.memory_space<vmem>>) attributes {dimension_semantics = [#tpu.dimension_semantics<parallel>], iteration_bounds = array<i64: 1>, scalar_prefetch = 0 : i64, scratch_operands = 0 : i64, tpu.core_type = #tpu.core_type<tc>, window_params = [{transform_indices = @transform_0, window_bounds = array<i64: 8, 16>}, {pipeline_mode = #tpu.pipeline_mode<synchronous>, transform_indices = @transform_1, window_bounds = array<i64: 16, 128>}, {pipeline_mode = #tpu.pipeline_mode<synchronous>, transform_indices = @transform_2, window_bounds = array<i64: 1, 128>}, {pipeline_mode = #tpu.pipeline_mode<synchronous>, transform_indices = @transform_3, window_bounds = array<i64: 128, 128>}, {pipeline_mode = #tpu.pipeline_mode<synchronous>, transform_indices = @transform_4, window_bounds = array<i64: 1, 128>}, {pipeline_mode = #tpu.pipeline_mode<synchronous>, transform_indices = @transform_5, window_bounds = array<i64: 128, 128>}, {pipeline_mode = #tpu.pipeline_mode<synchronous>, transform_indices = @transform_6, window_bounds = array<i64: 1, 128>}, {pipeline_mode = #tpu.pipeline_mode<synchronous>, transform_indices = @transform_7, window_bounds = array<i64: 128, 32>}, {pipeline_mode = #tpu.pipeline_mode<synchronous>, transform_indices = @transform_8, window_bounds = array<i64: 1, 32>}, {transform_indices = @transform_9, window_bounds = array<i64: 8, 32>}]} {
    %c0 = arith.constant 0 : index
    %c0_0 = arith.constant 0 : index
    %0 = vector.load %arg1[%c0, %c0_0] : memref<8x16xf32, #tpu.memory_space<vmem>>, vector<8x16xf32>
    %c0_1 = arith.constant 0 : index
    %c0_2 = arith.constant 0 : index
    %1 = vector.load %arg2[%c0_1, %c0_2] : memref<16x128xf32, #tpu.memory_space<vmem>>, vector<16x128xf32>
    %cst = arith.constant dense<0.000000e+00> : vector<8x128xf32>
    %2 = tpu.matmul %0, %1, %cst {dimension_numbers = #tpu.dot_dimension_numbers<[1], [0], [0], [1], [0, 0, 1, 1], [], []>} : vector<8x16xf32>, vector<16x128xf32>, vector<8x128xf32> -> vector<8x128xf32>
    %c0_3 = arith.constant 0 : index
    %c0_4 = arith.constant 0 : index
    %3 = vector.load %arg3[%c0_3, %c0_4] : memref<1x128xf32, #tpu.memory_space<vmem>>, vector<1x128xf32>
    %4 = vector.broadcast %3 : vector<1x128xf32> to vector<8x128xf32>
    %5 = arith.addf %2, %4 : vector<8x128xf32>
    %cst_5 = arith.constant 0.000000e+00 : f32
    %6 = vector.broadcast %cst_5 : f32 to vector<8x128xf32>
    %7 = arith.maximumf %5, %6 : vector<8x128xf32>
    %c0_6 = arith.constant 0 : index
    %c0_7 = arith.constant 0 : index
    %8 = vector.load %arg4[%c0_6, %c0_7] : memref<128x128xf32, #tpu.memory_space<vmem>>, vector<128x128xf32>
    %cst_8 = arith.constant dense<0.000000e+00> : vector<8x128xf32>
    %9 = tpu.matmul %7, %8, %cst_8 {dimension_numbers = #tpu.dot_dimension_numbers<[1], [0], [0], [1], [0, 0, 1, 1], [], []>} : vector<8x128xf32>, vector<128x128xf32>, vector<8x128xf32> -> vector<8x128xf32>
    %c0_9 = arith.constant 0 : index
    %c0_10 = arith.constant 0 : index
    %10 = vector.load %arg5[%c0_9, %c0_10] : memref<1x128xf32, #tpu.memory_space<vmem>>, vector<1x128xf32>
    %11 = vector.broadcast %10 : vector<1x128xf32> to vector<8x128xf32>
    %12 = arith.addf %9, %11 : vector<8x128xf32>
    %cst_11 = arith.constant 0.000000e+00 : f32
    %13 = vector.broadcast %cst_11 : f32 to vector<8x128xf32>
    %14 = arith.maximumf %12, %13 : vector<8x128xf32>
    %c0_12 = arith.constant 0 : index
    %c0_13 = arith.constant 0 : index
    %15 = vector.load %arg6[%c0_12, %c0_13] : memref<128x128xf32, #tpu.memory_space<vmem>>, vector<128x128xf32>
    %cst_14 = arith.constant dense<0.000000e+00> : vector<8x128xf32>
    %16 = tpu.matmul %14, %15, %cst_14 {dimension_numbers = #tpu.dot_dimension_numbers<[1], [0], [0], [1], [0, 0, 1, 1], [], []>} : vector<8x128xf32>, vector<128x128xf32>, vector<8x128xf32> -> vector<8x128xf32>
    %c0_15 = arith.constant 0 : index
    %c0_16 = arith.constant 0 : index
    %17 = vector.load %arg7[%c0_15, %c0_16] : memref<1x128xf32, #tpu.memory_space<vmem>>, vector<1x128xf32>
    %18 = vector.broadcast %17 : vector<1x128xf32> to vector<8x128xf32>
    %19 = arith.addf %16, %18 : vector<8x128xf32>
    %cst_17 = arith.constant 0.000000e+00 : f32
    %20 = vector.broadcast %cst_17 : f32 to vector<8x128xf32>
    %21 = arith.maximumf %19, %20 : vector<8x128xf32>
    %c0_18 = arith.constant 0 : index
    %c0_19 = arith.constant 0 : index
    %22 = vector.load %arg8[%c0_18, %c0_19] : memref<128x32xf32, #tpu.memory_space<vmem>>, vector<128x32xf32>
    %cst_20 = arith.constant dense<0.000000e+00> : vector<8x32xf32>
    %23 = tpu.matmul %21, %22, %cst_20 {dimension_numbers = #tpu.dot_dimension_numbers<[1], [0], [0], [1], [0, 0, 1, 1], [], []>} : vector<8x128xf32>, vector<128x32xf32>, vector<8x32xf32> -> vector<8x32xf32>
    %c0_21 = arith.constant 0 : index
    %c0_22 = arith.constant 0 : index
    %24 = vector.load %arg9[%c0_21, %c0_22] : memref<1x32xf32, #tpu.memory_space<vmem>>, vector<1x32xf32>
    %25 = vector.broadcast %24 : vector<1x32xf32> to vector<8x32xf32>
    %26 = arith.addf %23, %25 : vector<8x32xf32>
    %27 = arith.negf %26 : vector<8x32xf32>
    %28 = math.exp %27 : vector<8x32xf32>
    %cst_23 = arith.constant 1.000000e+00 : f32
    %29 = vector.broadcast %cst_23 : f32 to vector<8x32xf32>
    %30 = arith.addf %29, %28 : vector<8x32xf32>
    %31 = arith.divf %29, %30 : vector<8x32xf32>
    %c0_24 = arith.constant 0 : index
    %c0_25 = arith.constant 0 : index
    %32 = vector.load %arg10[%c0_24, %c0_25] : memref<8x32xf32, #tpu.memory_space<vmem>>, vector<8x32xf32>
    tpu.vector_store %arg10[%c0_24, %c0_25], %31 {strides = array<i32>} : memref<8x32xf32, #tpu.memory_space<vmem>>, vector<8x32xf32>,
    return
  }
  func.func @transform_0(%arg0: i32) -> (i32, i32) {
    %c0_i32 = arith.constant 0 : i32
    %c0_i32_0 = arith.constant 0 : i32
    return %arg0, %c0_i32 : i32, i32
  }
  func.func @transform_1(%arg0: i32) -> (i32, i32) {
    %c0_i32 = arith.constant 0 : i32
    %c0_i32_0 = arith.constant 0 : i32
    %c0_i32_1 = arith.constant 0 : i32
    return %c0_i32, %c0_i32_0 : i32, i32
  }
  func.func @transform_2(%arg0: i32) -> (i32, i32) {
    %c0_i32 = arith.constant 0 : i32
    %c0_i32_0 = arith.constant 0 : i32
    %c0_i32_1 = arith.constant 0 : i32
    return %c0_i32, %c0_i32_0 : i32, i32
  }
  func.func @transform_3(%arg0: i32) -> (i32, i32) {
    %c0_i32 = arith.constant 0 : i32
    %c0_i32_0 = arith.constant 0 : i32
    %c0_i32_1 = arith.constant 0 : i32
    return %c0_i32, %c0_i32_0 : i32, i32
  }
  func.func @transform_4(%arg0: i32) -> (i32, i32) {
    %c0_i32 = arith.constant 0 : i32
    %c0_i32_0 = arith.constant 0 : i32
    %c0_i32_1 = arith.constant 0 : i32
    return %c0_i32, %c0_i32_0 : i32, i32
  }
  func.func @transform_5(%arg0: i32) -> (i32, i32) {
    %c0_i32 = arith.constant 0 : i32
    %c0_i32_0 = arith.constant 0 : i32
    %c0_i32_1 = arith.constant 0 : i32
    return %c0_i32, %c0_i32_0 : i32, i32
  }
  func.func @transform_6(%arg0: i32) -> (i32, i32) {
    %c0_i32 = arith.constant 0 : i32
    %c0_i32_0 = arith.constant 0 : i32
    %c0_i32_1 = arith.constant 0 : i32
    return %c0_i32, %c0_i32_0 : i32, i32
  }
  func.func @transform_7(%arg0: i32) -> (i32, i32) {
    %c0_i32 = arith.constant 0 : i32
    %c0_i32_0 = arith.constant 0 : i32
    %c0_i32_1 = arith.constant 0 : i32
    return %c0_i32, %c0_i32_0 : i32, i32
  }
  func.func @transform_8(%arg0: i32) -> (i32, i32) {
    %c0_i32 = arith.constant 0 : i32
    %c0_i32_0 = arith.constant 0 : i32
    %c0_i32_1 = arith.constant 0 : i32
    return %c0_i32, %c0_i32_0 : i32, i32
  }
  func.func @transform_9(%arg0: i32) -> (i32, i32) {
    %c0_i32 = arith.constant 0 : i32
    %c0_i32_0 = arith.constant 0 : i32
    return %arg0, %c0_i32 : i32, i32
  }
}

</mosaic_0001>

<bundles_post_ra>
// kernel: tpu_custom_call.1
= control target key start
LH: loop header
LB: loop body
LE: loop exit
PB: predicated region body
PF: predicated region fallthrough
CT: control target
= control target key end

     0   :  { %14 = vsyncpa [#allocation3], 0  ;;  %s899_s0 = inlined_call_operand.vmem [shape: f32[8,16], index: 0, kind: input, shape index: {}]   ;;  %s900_s1 = inlined_call_operand.vmem [shape: f32[16,128], index: 1, kind: input, shape index: {}]   ;;  %s901_s2 = inlined_call_operand.vmem [shape: f32[1,128], index: 2, kind: input, shape index: {}]   ;;  %s902_s3 = inlined_call_operand.vmem [shape: f32[128,128], index: 3, kind: input, shape index: {}]   ;;  %s903_s4 = inlined_call_operand.vmem [shape: f32[1,128], index: 4, kind: input, shape index: {}]   ;;  %s904_s5 = inlined_call_operand.hbm [shape: f32[128,128], index: 5, kind: input, shape index: {}]   ;;  %s905_s6 = inlined_call_operand.vmem [shape: f32[1,128], index: 6, kind: input, shape index: {}]   ;;  %s906_s7 = inlined_call_operand.vmem [shape: f32[128,32], index: 7, kind: input, shape index: {}]   ;;  %s907_s8 = inlined_call_operand.vmem [shape: f32[1,32], index: 8, kind: input, shape index: {}]   ;;  %s908_s9 = inlined_call_operand.hbm [shape: f32[8,32], index: 9, kind: output, shape index: {}]  }
   0x1   :  { %15 = vsyncpa [#allocation4], 0  ;;  %s662_s30 = smov [#allocation2]  }
   0x2   :  { %s31_s10 = sshll.u32 %s662_s30, 4  ;;  %s32_s10 = int_to_ptr.vmem [resolvable:$true] %s31_s10 }
   0x3   :  { %s626_s11 = scalar_lea.vmem %s32_s10, 2048  ;;  %p631_p1 = scmp.lt.s32.totalorder %s32_s10, %s32_s10 }
   0x4   :  { %p627_p0 = scmp.ne.s32.totalorder %s32_s10, %s626_s11  ;;  %p632_p2 = scmp.lt.s32.totalorder %s626_s11, %s626_s11 }
   0x6   :  { %p633_p3 = por %p632_p2, %p631_p1 }
   0x8   :  { %p634_p4 = pnand %p633_p3, %p627_p0 }
   0xa   :  { %637 = shalt.err (!%p634_p4)
}
   0xb   :  { %s663_s12 = smov 128   ;;  %s664_s13 = smov 8  }
   0xc   :  { %37 = dma.hbm_to_vmem [thread:$0]  %s904_s5, 2048, %s32_s10, [#allocation3], %s663_s12, %s663_s12, %s664_s13  }
   0xd   :  { %658 = dma.done.wait [#allocation3], 2048  }
   0xe   :  { %659 = vsyncadd [#allocation3], 4294965248  ;;  %v665_v0 = vmov 0.0   ;;  %vm666_vm0 = vmmov 0   ;;  %v49_v1 = vld [vmem:[%s900_s1 + $0x8] sm:$0xff]  ;;  %v48_v2 = vld [vmem:[%s900_s1] sm:$0xff] }
   0xf   :  { %496 = vmatprep.subr.mxu0 %v665_v0  ;;  %500 = vmatprep.mubr.msk.f32.mxu0 %vm666_vm0, %v665_v0  ;;  %v47_v3 = vld [vmem:[%s899_s0] sm:$0xff]  ;;  %vm57_vm1 = vcmask 130048   ;;  %v147_v4 = vld [vmem:[%s902_s3 + $0x78] sm:$0xff]  ;;  %v146_v5 = vld [vmem:[%s902_s3 + $0x70] sm:$0xff]  ;;  %vm419_vm2 = vcmask 261120  }
  0x10   :  { %503 = vmatprep.subr.mxu1 %v665_v0  ;;  %535 = vmatprep.mubr.msk.f32.mxu1 %vm666_vm0, %v665_v0  ;;  %v145_v6 = vld [vmem:[%s902_s3 + $0x68] sm:$0xff]  ;;  %v144_v7 = vld [vmem:[%s902_s3 + $0x60] sm:$0xff]  ;;  %v143_v8 = vld [vmem:[%s902_s3 + $0x58] sm:$0xff] }
  0x11   :  { %497 = vmatpush3.msra.mxu0 %v49_v1  ;;  %504 = vmatpush3.msra.mxu1 %v147_v4  ;;  %v142_v9 = vld [vmem:[%s902_s3 + $0x50] sm:$0xff]  ;;  %v141_v10 = vld [vmem:[%s902_s3 + $0x48] sm:$0xff]  ;;  %v140_v11 = vld [vmem:[%s902_s3 + $0x40] sm:$0xff] }
  0x12   :  { %498 = vmatprep.subr.mxu0 %v665_v0  ;;  %505 = vmatprep.subr.mxu1 %v665_v0  ;;  %v139_v12 = vld [vmem:[%s902_s3 + $0x38] sm:$0xff]  ;;  %v138_v13 = vld [vmem:[%s902_s3 + $0x30] sm:$0xff]  ;;  %v137_v14 = vld [vmem:[%s902_s3 + $0x28] sm:$0xff] }
  0x13   :  { %499 = vmatpush3.msra.mxu0 %v48_v2  ;;  %506 = vmatpush3.msra.mxu1 %v146_v5  ;;  %v136_v15 = vld [vmem:[%s902_s3 + $0x20] sm:$0xff]  ;;  %v135_v16 = vld [vmem:[%s902_s3 + $0x18] sm:$0xff]  ;;  %v134_v17 = vld [vmem:[%s902_s3 + $0x10] sm:$0xff] }
  0x14   :  { %501 = vmatmul.mubr.msk.f32.vlgmr.msra.gmra.mxu0 %vm57_vm1, %v47_v3  ;;  %507 = vmatprep.subr.mxu1 %v665_v0  ;;  %v133_v18 = vld [vmem:[%s902_s3 + $0x8] sm:$0xff]  ;;  %v132_v19 = vld [vmem:[%s902_s3] sm:$0xff]  ;;  %v241_v20 = vld [vmem:[#allocation2 + $0x78] sm:$0xff] }
  0x15   :  { %538 = vmatprep.subr.mxu0 %v665_v0  ;;  %508 = vmatpush3.msra.mxu1 %v145_v6  ;;  %v240_v21 = vld [vmem:[#allocation2 + $0x70] sm:$0xff]  ;;  %v239_v22 = vld [vmem:[#allocation2 + $0x68] sm:$0xff]  ;;  %v238_v23 = vld [vmem:[#allocation2 + $0x60] sm:$0xff] }
  0x16   :  { %570 = vmatprep.mubr.msk.f32.mxu0 %vm666_vm0, %v665_v0  ;;  %509 = vmatprep.subr.mxu1 %v665_v0  ;;  %v237_v24 = vld [vmem:[#allocation2 + $0x58] sm:$0xff]  ;;  %v236_v25 = vld [vmem:[#allocation2 + $0x50] sm:$0xff]  ;;  %v235_v26 = vld [vmem:[#allocation2 + $0x48] sm:$0xff] }
  0x17   :  { %510 = vmatpush3.msra.mxu1 %v144_v7  ;;  %539 = vmatpush3.msra.mxu0 %v241_v20  ;;  %v234_v27 = vld [vmem:[#allocation2 + $0x40] sm:$0xff]  ;;  %v233_v28 = vld [vmem:[#allocation2 + $0x38] sm:$0xff]  ;;  %v232_v29 = vld [vmem:[#allocation2 + $0x30] sm:$0xff] }
  0x18   :  { %511 = vmatprep.subr.mxu1 %v665_v0  ;;  %540 = vmatprep.subr.mxu0 %v665_v0  ;;  %v231_v30 = vld [vmem:[#allocation2 + $0x28] sm:$0xff]  ;;  %v230_v31 = vld [vmem:[#allocation2 + $0x20] sm:$0xff]  ;;  %v229_v32 = vld [vmem:[#allocation2 + $0x18] sm:$0xff] }
  0x19   :  { %512 = vmatpush3.msra.mxu1 %v143_v8  ;;  %541 = vmatpush3.msra.mxu0 %v240_v21  ;;  %v436_v33 = vld [vmem:[%s901_s2] ss:$0 sm:$0xff]  ;;  %v228_v38 = vld [vmem:[#allocation2 + $0x10] sm:$0xff]  ;;  %v227_v39 = vld [vmem:[#allocation2 + $0x8] sm:$0xff] }
  0x1a   :  { %513 = vmatprep.subr.mxu1 %v665_v0  ;;  %542 = vmatprep.subr.mxu0 %v665_v0  ;;  %v226_v40 = vld [vmem:[#allocation2] sm:$0xff]  ;;  %v335_v41 = vld [vmem:[%s906_s7 + $0x78] sm:$0xff]  ;;  %v334_v42 = vld [vmem:[%s906_s7 + $0x70] sm:$0xff] }
  0x1b   :  { %514 = vmatpush3.msra.mxu1 %v142_v9  ;;  %543 = vmatpush3.msra.mxu0 %v239_v22  ;;  %v333_v43 = vld [vmem:[%s906_s7 + $0x68] sm:$0xff]  ;;  %v332_v44 = vld [vmem:[%s906_s7 + $0x60] sm:$0xff]  ;;  %v331_v45 = vld [vmem:[%s906_s7 + $0x58] sm:$0xff] }
  0x1c   :  { %515 = vmatprep.subr.mxu1 %v665_v0  ;;  %544 = vmatprep.subr.mxu0 %v665_v0  ;;  %v330_v46 = vld [vmem:[%s906_s7 + $0x50] sm:$0xff]  ;;  %v329_v47 = vld [vmem:[%s906_s7 + $0x48] sm:$0xff]  ;;  %v328_v48 = vld [vmem:[%s906_s7 + $0x40] sm:$0xff] }
  0x1d   :  { %516 = vmatpush3.msra.mxu1 %v141_v10  ;;  %545 = vmatpush3.msra.mxu0 %v238_v23  ;;  %v327_v49 = vld [vmem:[%s906_s7 + $0x38] sm:$0xff]  ;;  %v326_v50 = vld [vmem:[%s906_s7 + $0x30] sm:$0xff]  ;;  %v325_v51 = vld [vmem:[%s906_s7 + $0x28] sm:$0xff] }
  0x1e   :  { %517 = vmatprep.subr.mxu1 %v665_v0  ;;  %546 = vmatprep.subr.mxu0 %v665_v0  ;;  %v324_v52 = vld [vmem:[%s906_s7 + $0x20] sm:$0xff]  ;;  %v323_v53 = vld [vmem:[%s906_s7 + $0x18] sm:$0xff]  ;;  %v322_v59 = vld [vmem:[%s906_s7 + $0x10] sm:$0xff] }
  0x1f   :  { %518 = vmatpush3.msra.mxu1 %v140_v11  ;;  %547 = vmatpush3.msra.mxu0 %v237_v24  ;;  %v438_v54 = vld [vmem:[%s903_s4] ss:$0 sm:$0xff]  ;;  %v321_v60 = vld [vmem:[%s906_s7 + $0x8] sm:$0xff] }
  0x20   :  { %519 = vmatprep.subr.mxu1 %v665_v0  ;;  %548 = vmatprep.subr.mxu0 %v665_v0  ;;  %v320_v61 = vld [vmem:[%s906_s7] sm:$0xff]  ;;  %s667_s7 = smov [#allocation5]  }
  0x21   :  { %520 = vmatpush3.msra.mxu1 %v139_v12  ;;  %549 = vmatpush3.msra.mxu0 %v236_v25  ;;  %v439_v62 = vld [vmem:[%s905_s6] ss:$0 sm:$0xff]  ;;  %s427_s17 = sshll.u32 %s667_s7, 4  ;;  %s428_s17 = int_to_ptr.vmem [resolvable:$true] %s427_s17 }
  0x22   :  { %521 = vmatprep.subr.mxu1 %v665_v0  ;;  %550 = vmatprep.subr.mxu0 %v665_v0  ;;  %v440_v4 = vld [vmem:[%s907_s8] ss:$0 sm:$0xff]  ;;  %s638_s6 = scalar_lea.vmem %s428_s17, 128  ;;  %p643_p6 = scmp.lt.s32.totalorder %s428_s17, %s428_s17 }
  0x23   :  { %522 = vmatpush3.msra.mxu1 %v138_v13  ;;  %551 = vmatpush3.msra.mxu0 %v235_v26  ;;  %p639_p5 = scmp.ne.s32.totalorder %s428_s17, %s638_s6  ;;  %p644_p7 = scmp.lt.s32.totalorder %s638_s6, %s638_s6 }
  0x24   :  { %523 = vmatprep.subr.mxu1 %v665_v0  ;;  %552 = vmatprep.subr.mxu0 %v665_v0 }
  0x25   :  { %524 = vmatpush3.msra.mxu1 %v137_v14  ;;  %553 = vmatpush3.msra.mxu0 %v234_v27  ;;  %p645_p8 = por %p644_p7, %p643_p6 }
  0x26   :  { %525 = vmatprep.subr.mxu1 %v665_v0  ;;  %554 = vmatprep.subr.mxu0 %v665_v0 }
  0x27   :  { %526 = vmatpush3.msra.mxu1 %v136_v15  ;;  %555 = vmatpush3.msra.mxu0 %v233_v28  ;;  %p646_p9 = pnand %p645_p8, %p639_p5 }
  0x28   :  { %527 = vmatprep.subr.mxu1 %v665_v0  ;;  %556 = vmatprep.subr.mxu0 %v665_v0 }
  0x29   :  { %528 = vmatpush3.msra.mxu1 %v135_v16  ;;  %557 = vmatpush3.msra.mxu0 %v232_v29 }
  0x2a   :  { %529 = vmatprep.subr.mxu1 %v665_v0  ;;  %558 = vmatprep.subr.mxu0 %v665_v0 }
  0x2b   :  { %530 = vmatpush3.msra.mxu1 %v134_v17  ;;  %559 = vmatpush3.msra.mxu0 %v231_v30 }
  0x2c   :  { %531 = vmatprep.subr.mxu1 %v665_v0  ;;  %560 = vmatprep.subr.mxu0 %v665_v0 }
  0x2d   :  { %532 = vmatpush3.msra.mxu1 %v133_v18  ;;  %561 = vmatpush3.msra.mxu0 %v230_v31 }
  0x2e   :  { %533 = vmatprep.subr.mxu1 %v665_v0  ;;  %562 = vmatprep.subr.mxu0 %v665_v0 }
  0x2f   :  { %534 = vmatpush3.msra.mxu1 %v132_v19  ;;  %563 = vmatpush3.msra.mxu0 %v229_v32 }
  0x30   :  { %573 = vmatprep.subr.mxu1 %v665_v0  ;;  %564 = vmatprep.subr.mxu0 %v665_v0 }
  0x31   :  { %565 = vmatpush3.msra.mxu0 %v228_v38 }
  0x32   :  { %566 = vmatprep.subr.mxu0 %v665_v0 }
  0x33   :  { %567 = vmatpush3.msra.mxu0 %v227_v39 }
  0x34   :  { %568 = vmatprep.subr.mxu0 %v665_v0 }
  0x35   :  { %569 = vmatpush3.msra.mxu0 %v226_v40 }
  0xd4   :  { %v127_v34 = vpop.f32.mrf.mxu0 }
  0xd5   :  { %v128_v35 = vadd.f32 %v436_v33, %v127_v34 }
  0xd6   :  { %v502_v36 = vpop.f32.mrf.mxu0 }
  0xd7   :  { %v131_v37 = vmax.f32 %v128_v35, 0.0 }
  0xd9   :  { %536 = vmatmul.mubr.f32.vlgmr.msra.gmra.mxu1 %v131_v37 }
  0xda   :  { %605 = vmatprep.mubr.msk.f32.mxu1 %vm666_vm0, %v665_v0  ;;  %574 = vmatpush3.msra.mxu1 %v335_v41 }
  0xdb   :  { %575 = vmatprep.subr.mxu1 %v665_v0 }
  0xdc   :  { %576 = vmatpush3.msra.mxu1 %v334_v42 }
  0xdd   :  { %577 = vmatprep.subr.mxu1 %v665_v0 }
  0xde   :  { %578 = vmatpush3.msra.mxu1 %v333_v43 }
  0xdf   :  { %579 = vmatprep.subr.mxu1 %v665_v0 }
  0xe0   :  { %580 = vmatpush3.msra.mxu1 %v332_v44 }
  0xe1   :  { %581 = vmatprep.subr.mxu1 %v665_v0 }
  0xe2   :  { %582 = vmatpush3.msra.mxu1 %v331_v45 }
  0xe3   :  { %583 = vmatprep.subr.mxu1 %v665_v0 }
  0xe4   :  { %584 = vmatpush3.msra.mxu1 %v330_v46 }
  0xe5   :  { %585 = vmatprep.subr.mxu1 %v665_v0 }
  0xe6   :  { %586 = vmatpush3.msra.mxu1 %v329_v47 }
  0xe7   :  { %587 = vmatprep.subr.mxu1 %v665_v0 }
  0xe8   :  { %588 = vmatpush3.msra.mxu1 %v328_v48 }
  0xe9   :  { %589 = vmatprep.subr.mxu1 %v665_v0 }
  0xea   :  { %590 = vmatpush3.msra.mxu1 %v327_v49 }
  0xeb   :  { %591 = vmatprep.subr.mxu1 %v665_v0 }
  0xec   :  { %592 = vmatpush3.msra.mxu1 %v326_v50 }
  0xed   :  { %593 = vmatprep.subr.mxu1 %v665_v0 }
  0xee   :  { %594 = vmatpush3.msra.mxu1 %v325_v51 }
  0xef   :  { %595 = vmatprep.subr.mxu1 %v665_v0 }
  0xf0   :  { %596 = vmatpush3.msra.mxu1 %v324_v52 }
  0xf1   :  { %597 = vmatprep.subr.mxu1 %v665_v0 }
  0xf2   :  { %598 = vmatpush3.msra.mxu1 %v323_v53 }
  0xf3   :  { %599 = vmatprep.subr.mxu1 %v665_v0 }
  0xf4   :  { %600 = vmatpush3.msra.mxu1 %v322_v59 }
  0xf5   :  { %601 = vmatprep.subr.mxu1 %v665_v0 }
  0xf6   :  { %602 = vmatpush3.msra.mxu1 %v321_v60 }
  0xf7   :  { %603 = vmatprep.subr.mxu1 %v665_v0 }
  0xf8   :  { %604 = vmatpush3.msra.mxu1 %v320_v61 }
 0x199   :  { %v221_v55 = vpop.f32.mrf.mxu1 }
 0x19a   :  { %v222_v56 = vadd.f32 %v438_v54, %v221_v55 }
 0x19b   :  { %v537_v57 = vpop.f32.mrf.mxu1 }
 0x19c   :  { %v225_v58 = vmax.f32 %v222_v56, 0.0 }
 0x19e   :  { %571 = vmatmul.mubr.f32.vlgmr.msra.gmra.mxu0 %v225_v58 }
 0x25e   :  { %v315_v63 = vpop.f32.mrf.mxu0 }
 0x25f   :  { %v316_v1 = vadd.f32 %v439_v62, %v315_v63 }
 0x260   :  { %v572_v2 = vpop.f32.mrf.mxu0 }
 0x261   :  { %v319_v3 = vmax.f32 %v316_v1, 0.0 }
 0x263   :  { %606 = vmatmul.mubr.f32.vlgmr.msra.gmra.mxu1 %v319_v3 }
 0x323   :  { %v409_v5 = vpop.f32.mrf.mxu1 }
 0x324   :  { %v410_v0 = vadd.f32 %v440_v4, %v409_v5 }
 0x325   :  { %v607_v6 = vpop.f32.mrf.mxu1 }
 0x326   :  { %v441_v7 = vmul.f32 -1.442695, %v410_v0 }
 0x328   :  { %614 = vpow2.f32 %v441_v7 }
 0x335   :  { %v615_v8 = vpop.eup %614 }
 0x336   :  { %v416_v9 = vadd.f32 1.0, %v615_v8 }
 0x338   :  { %616 = vrcp.f32 %v416_v9 }
 0x345   :  { %v617_v10 = vpop.eup %616 }
 0x346   :  { %420 = vst.msk [vmem:[#allocation5] sm:$0xff] %vm419_vm2, %v617_v10 }
 0x347   :  { %649 = shalt.err (!%p646_p9)
}
 0x348   :  { %430 = dma.vmem_to_hbm [thread:$0]  %s428_s17, 128, %s908_s9, [#allocation4]  }
 0x349   :  { %660 = dma.done.wait [#allocation4], 128  }
 0x34a   :  { %661 = vsyncadd [#allocation4], 4294967168 }
 0x34b   :  { %434 = vsyncpa [#allocation3], 1 }
 0x34c   :  { %435 = vsyncpa [#allocation4], 1 }

// kernel: tpu_custom_call.1
= control target key start
LH: loop header
LB: loop body
LE: loop exit
PB: predicated region body
PF: predicated region fallthrough
CT: control target
= control target key end

     0   :  { %14 = vsyncpa [#allocation3], 0  ;;  %s899_s0 = inlined_call_operand.vmem [shape: f32[8,16], index: 0, kind: input, shape index: {}]   ;;  %s900_s1 = inlined_call_operand.vmem [shape: f32[16,128], index: 1, kind: input, shape index: {}]   ;;  %s901_s2 = inlined_call_operand.vmem [shape: f32[1,128], index: 2, kind: input, shape index: {}]   ;;  %s902_s3 = inlined_call_operand.vmem [shape: f32[128,128], index: 3, kind: input, shape index: {}]   ;;  %s903_s4 = inlined_call_operand.vmem [shape: f32[1,128], index: 4, kind: input, shape index: {}]   ;;  %s904_s5 = inlined_call_operand.hbm [shape: f32[128,128], index: 5, kind: input, shape index: {}]   ;;  %s905_s6 = inlined_call_operand.vmem [shape: f32[1,128], index: 6, kind: input, shape index: {}]   ;;  %s906_s7 = inlined_call_operand.vmem [shape: f32[128,32], index: 7, kind: input, shape index: {}]   ;;  %s907_s8 = inlined_call_operand.vmem [shape: f32[1,32], index: 8, kind: input, shape index: {}]   ;;  %s908_s9 = inlined_call_operand.hbm [shape: f32[8,32], index: 9, kind: output, shape index: {}]  }
   0x1   :  { %15 = vsyncpa [#allocation4], 0  ;;  %s662_s30 = smov [#allocation2]  }
   0x2   :  { %s31_s10 = sshll.u32 %s662_s30, 4  ;;  %s32_s10 = int_to_ptr.vmem [resolvable:$true] %s31_s10 }
   0x3   :  { %s626_s11 = scalar_lea.vmem %s32_s10, 2048  ;;  %p631_p1 = scmp.lt.s32.totalorder %s32_s10, %s32_s10 }
   0x4   :  { %p627_p0 = scmp.ne.s32.totalorder %s32_s10, %s626_s11  ;;  %p632_p2 = scmp.lt.s32.totalorder %s626_s11, %s626_s11 }
   0x6   :  { %p633_p3 = por %p632_p2, %p631_p1 }
   0x8   :  { %p634_p4 = pnand %p633_p3, %p627_p0 }
   0xa   :  { %637 = shalt.err (!%p634_p4)
}
   0xb   :  { %s663_s12 = smov 128   ;;  %s664_s13 = smov 8  }
   0xc   :  { %37 = dma.hbm_to_vmem [thread:$0]  %s904_s5, 2048, %s32_s10, [#allocation3], %s663_s12, %s663_s12, %s664_s13  }
   0xd   :  { %658 = dma.done.wait [#allocation3], 2048  }
   0xe   :  { %659 = vsyncadd [#allocation3], 4294965248  ;;  %v665_v0 = vmov 0.0   ;;  %vm666_vm0 = vmmov 0   ;;  %v49_v1 = vld [vmem:[%s900_s1 + $0x8] sm:$0xff]  ;;  %v48_v2 = vld [vmem:[%s900_s1] sm:$0xff] }
   0xf   :  { %496 = vmatprep.subr.mxu0 %v665_v0  ;;  %500 = vmatprep.mubr.msk.f32.mxu0 %vm666_vm0, %v665_v0  ;;  %v47_v3 = vld [vmem:[%s899_s0] sm:$0xff]  ;;  %vm57_vm1 = vcmask 130048   ;;  %v147_v4 = vld [vmem:[%s902_s3 + $0x78] sm:$0xff]  ;;  %v146_v5 = vld [vmem:[%s902_s3 + $0x70] sm:$0xff]  ;;  %vm419_vm2 = vcmask 261120  }
  0x10   :  { %503 = vmatprep.subr.mxu1 %v665_v0  ;;  %535 = vmatprep.mubr.msk.f32.mxu1 %vm666_vm0, %v665_v0  ;;  %v145_v6 = vld [vmem:[%s902_s3 + $0x68] sm:$0xff]  ;;  %v144_v7 = vld [vmem:[%s902_s3 + $0x60] sm:$0xff]  ;;  %v143_v8 = vld [vmem:[%s902_s3 + $0x58] sm:$0xff] }
  0x11   :  { %497 = vmatpush3.msra.mxu0 %v49_v1  ;;  %504 = vmatpush3.msra.mxu1 %v147_v4  ;;  %v142_v9 = vld [vmem:[%s902_s3 + $0x50] sm:$0xff]  ;;  %v141_v10 = vld [vmem:[%s902_s3 + $0x48] sm:$0xff]  ;;  %v140_v11 = vld [vmem:[%s902_s3 + $0x40] sm:$0xff] }
  0x12   :  { %498 = vmatprep.subr.mxu0 %v665_v0  ;;  %505 = vmatprep.subr.mxu1 %v665_v0  ;;  %v139_v12 = vld [vmem:[%s902_s3 + $0x38] sm:$0xff]  ;;  %v138_v13 = vld [vmem:[%s902_s3 + $0x30] sm:$0xff]  ;;  %v137_v14 = vld [vmem:[%s902_s3 + $0x28] sm:$0xff] }
  0x13   :  { %499 = vmatpush3.msra.mxu0 %v48_v2  ;;  %506 = vmatpush3.msra.mxu1 %v146_v5  ;;  %v136_v15 = vld [vmem:[%s902_s3 + $0x20] sm:$0xff]  ;;  %v135_v16 = vld [vmem:[%s902_s3 + $0x18] sm:$0xff]  ;;  %v134_v17 = vld [vmem:[%s902_s3 + $0x10] sm:$0xff] }
  0x14   :  { %501 = vmatmul.mubr.msk.f32.vlgmr.msra.gmra.mxu0 %vm57_vm1, %v47_v3  ;;  %507 = vmatprep.subr.mxu1 %v665_v0  ;;  %v133_v18 = vld [vmem:[%s902_s3 + $0x8] sm:$0xff]  ;;  %v132_v19 = vld [vmem:[%s902_s3] sm:$0xff]  ;;  %v241_v20 = vld [vmem:[#allocation2 + $0x78] sm:$0xff] }
  0x15   :  { %538 = vmatprep.subr.mxu0 %v665_v0  ;;  %508 = vmatpush3.msra.mxu1 %v145_v6  ;;  %v240_v21 = vld [vmem:[#allocation2 + $0x70] sm:$0xff]  ;;  %v239_v22 = vld [vmem:[#allocation2 + $0x68] sm:$0xff]  ;;  %v238_v23 = vld [vmem:[#allocation2 + $0x60] sm:$0xff] }
  0x16   :  { %570 = vmatprep.mubr.msk.f32.mxu0 %vm666_vm0, %v665_v0  ;;  %509 = vmatprep.subr.mxu1 %v665_v0  ;;  %v237_v24 = vld [vmem:[#allocation2 + $0x58] sm:$0xff]  ;;  %v236_v25 = vld [vmem:[#allocation2 + $0x50] sm:$0xff]  ;;  %v235_v26 = vld [vmem:[#allocation2 + $0x48] sm:$0xff] }
  0x17   :  { %510 = vmatpush3.msra.mxu1 %v144_v7  ;;  %539 = vmatpush3.msra.mxu0 %v241_v20  ;;  %v234_v27 = vld [vmem:[#allocation2 + $0x40] sm:$0xff]  ;;  %v233_v28 = vld [vmem:[#allocation2 + $0x38] sm:$0xff]  ;;  %v232_v29 = vld [vmem:[#allocation2 + $0x30] sm:$0xff] }
  0x18   :  { %511 = vmatprep.subr.mxu1 %v665_v0  ;;  %540 = vmatprep.subr.mxu0 %v665_v0  ;;  %v231_v30 = vld [vmem:[#allocation2 + $0x28] sm:$0xff]  ;;  %v230_v31 = vld [vmem:[#allocation2 + $0x20] sm:$0xff]  ;;  %v229_v32 = vld [vmem:[#allocation2 + $0x18] sm:$0xff] }
  0x19   :  { %512 = vmatpush3.msra.mxu1 %v143_v8  ;;  %541 = vmatpush3.msra.mxu0 %v240_v21  ;;  %v436_v33 = vld [vmem:[%s901_s2] ss:$0 sm:$0xff]  ;;  %v228_v38 = vld [vmem:[#allocation2 + $0x10] sm:$0xff]  ;;  %v227_v39 = vld [vmem:[#allocation2 + $0x8] sm:$0xff] }
  0x1a   :  { %513 = vmatprep.subr.mxu1 %v665_v0  ;;  %542 = vmatprep.subr.mxu0 %v665_v0  ;;  %v226_v40 = vld [vmem:[#allocation2] sm:$0xff]  ;;  %v335_v41 = vld [vmem:[%s906_s7 + $0x78] sm:$0xff]  ;;  %v334_v42 = vld [vmem:[%s906_s7 + $0x70] sm:$0xff] }
  0x1b   :  { %514 = vmatpush3.msra.mxu1 %v142_v9  ;;  %543 = vmatpush3.msra.mxu0 %v239_v22  ;;  %v333_v43 = vld [vmem:[%s906_s7 + $0x68] sm:$0xff]  ;;  %v332_v44 = vld [vmem:[%s906_s7 + $0x60] sm:$0xff]  ;;  %v331_v45 = vld [vmem:[%s906_s7 + $0x58] sm:$0xff] }
  0x1c   :  { %515 = vmatprep.subr.mxu1 %v665_v0  ;;  %544 = vmatprep.subr.mxu0 %v665_v0  ;;  %v330_v46 = vld [vmem:[%s906_s7 + $0x50] sm:$0xff]  ;;  %v329_v47 = vld [vmem:[%s906_s7 + $0x48] sm:$0xff]  ;;  %v328_v48 = vld [vmem:[%s906_s7 + $0x40] sm:$0xff] }
  0x1d   :  { %516 = vmatpush3.msra.mxu1 %v141_v10  ;;  %545 = vmatpush3.msra.mxu0 %v238_v23  ;;  %v327_v49 = vld [vmem:[%s906_s7 + $0x38] sm:$0xff]  ;;  %v326_v50 = vld [vmem:[%s906_s7 + $0x30] sm:$0xff]  ;;  %v325_v51 = vld [vmem:[%s906_s7 + $0x28] sm:$0xff] }
  0x1e   :  { %517 = vmatprep.subr.mxu1 %v665_v0  ;;  %546 = vmatprep.subr.mxu0 %v665_v0  ;;  %v324_v52 = vld [vmem:[%s906_s7 + $0x20] sm:$0xff]  ;;  %v323_v53 = vld [vmem:[%s906_s7 + $0x18] sm:$0xff]  ;;  %v322_v59 = vld [vmem:[%s906_s7 + $0x10] sm:$0xff] }
  0x1f   :  { %518 = vmatpush3.msra.mxu1 %v140_v11  ;;  %547 = vmatpush3.msra.mxu0 %v237_v24  ;;  %v438_v54 = vld [vmem:[%s903_s4] ss:$0 sm:$0xff]  ;;  %v321_v60 = vld [vmem:[%s906_s7 + $0x8] sm:$0xff] }
  0x20   :  { %519 = vmatprep.subr.mxu1 %v665_v0  ;;  %548 = vmatprep.subr.mxu0 %v665_v0  ;;  %v320_v61 = vld [vmem:[%s906_s7] sm:$0xff]  ;;  %s667_s7 = smov [#allocation5]  }
  0x21   :  { %520 = vmatpush3.msra.mxu1 %v139_v12  ;;  %549 = vmatpush3.msra.mxu0 %v236_v25  ;;  %v439_v62 = vld [vmem:[%s905_s6] ss:$0 sm:$0xff]  ;;  %s427_s17 = sshll.u32 %s667_s7, 4  ;;  %s428_s17 = int_to_ptr.vmem [resolvable:$true] %s427_s17 }
  0x22   :  { %521 = vmatprep.subr.mxu1 %v665_v0  ;;  %550 = vmatprep.subr.mxu0 %v665_v0  ;;  %v440_v4 = vld [vmem:[%s907_s8] ss:$0 sm:$0xff]  ;;  %s638_s6 = scalar_lea.vmem %s428_s17, 128  ;;  %p643_p6 = scmp.lt.s32.totalorder %s428_s17, %s428_s17 }
  0x23   :  { %522 = vmatpush3.msra.mxu1 %v138_v13  ;;  %551 = vmatpush3.msra.mxu0 %v235_v26  ;;  %p639_p5 = scmp.ne.s32.totalorder %s428_s17, %s638_s6  ;;  %p644_p7 = scmp.lt.s32.totalorder %s638_s6, %s638_s6 }
  0x24   :  { %523 = vmatprep.subr.mxu1 %v665_v0  ;;  %552 = vmatprep.subr.mxu0 %v665_v0 }
  0x25   :  { %524 = vmatpush3.msra.mxu1 %v137_v14  ;;  %553 = vmatpush3.msra.mxu0 %v234_v27  ;;  %p645_p8 = por %p644_p7, %p643_p6 }
  0x26   :  { %525 = vmatprep.subr.mxu1 %v665_v0  ;;  %554 = vmatprep.subr.mxu0 %v665_v0 }
  0x27   :  { %526 = vmatpush3.msra.mxu1 %v136_v15  ;;  %555 = vmatpush3.msra.mxu0 %v233_v28  ;;  %p646_p9 = pnand %p645_p8, %p639_p5 }
  0x28   :  { %527 = vmatprep.subr.mxu1 %v665_v0  ;;  %556 = vmatprep.subr.mxu0 %v665_v0 }
  0x29   :  { %528 = vmatpush3.msra.mxu1 %v135_v16  ;;  %557 = vmatpush3.msra.mxu0 %v232_v29 }
  0x2a   :  { %529 = vmatprep.subr.mxu1 %v665_v0  ;;  %558 = vmatprep.subr.mxu0 %v665_v0 }
  0x2b   :  { %530 = vmatpush3.msra.mxu1 %v134_v17  ;;  %559 = vmatpush3.msra.mxu0 %v231_v30 }
  0x2c   :  { %531 = vmatprep.subr.mxu1 %v665_v0  ;;  %560 = vmatprep.subr.mxu0 %v665_v0 }
  0x2d   :  { %532 = vmatpush3.msra.mxu1 %v133_v18  ;;  %561 = vmatpush3.msra.mxu0 %v230_v31 }
  0x2e   :  { %533 = vmatprep.subr.mxu1 %v665_v0  ;;  %562 = vmatprep.subr.mxu0 %v665_v0 }
  0x2f   :  { %534 = vmatpush3.msra.mxu1 %v132_v19  ;;  %563 = vmatpush3.msra.mxu0 %v229_v32 }
  0x30   :  { %573 = vmatprep.subr.mxu1 %v665_v0  ;;  %564 = vmatprep.subr.mxu0 %v665_v0 }
  0x31   :  { %565 = vmatpush3.msra.mxu0 %v228_v38 }
  0x32   :  { %566 = vmatprep.subr.mxu0 %v665_v0 }
  0x33   :  { %567 = vmatpush3.msra.mxu0 %v227_v39 }
  0x34   :  { %568 = vmatprep.subr.mxu0 %v665_v0 }
  0x35   :  { %569 = vmatpush3.msra.mxu0 %v226_v40 }
  0xd4   :  { %v127_v34 = vpop.f32.mrf.mxu0 }
  0xd5   :  { %v128_v35 = vadd.f32 %v436_v33, %v127_v34 }
  0xd6   :  { %v502_v36 = vpop.f32.mrf.mxu0 }
  0xd7   :  { %v131_v37 = vmax.f32 %v128_v35, 0.0 }
  0xd9   :  { %536 = vmatmul.mubr.f32.vlgmr.msra.gmra.mxu1 %v131_v37 }
  0xda   :  { %605 = vmatprep.mubr.msk.f32.mxu1 %vm666_vm0, %v665_v0  ;;  %574 = vmatpush3.msra.mxu1 %v335_v41 }
  0xdb   :  { %575 = vmatprep.subr.mxu1 %v665_v0 }
  0xdc   :  { %576 = vmatpush3.msra.mxu1 %v334_v42 }
  0xdd   :  { %577 = vmatprep.subr.mxu1 %v665_v0 }
  0xde   :  { %578 = vmatpush3.msra.mxu1 %v333_v43 }
  0xdf   :  { %579 = vmatprep.subr.mxu1 %v665_v0 }
  0xe0   :  { %580 = vmatpush3.msra.mxu1 %v332_v44 }
  0xe1   :  { %581 = vmatprep.subr.mxu1 %v665_v0 }
  0xe2   :  { %582 = vmatpush3.msra.mxu1 %v331_v45 }
  0xe3   :  { %583 = vmatprep.subr.mxu1 %v665_v0 }
  0xe4   :  { %584 = vmatpush3.msra.mxu1 %v330_v46 }
  0xe5   :  { %585 = vmatprep.subr.mxu1 %v665_v0 }
  0xe6   :  { %586 = vmatpush3.msra.mxu1 %v329_v47 }
  0xe7   :  { %587 = vmatprep.subr.mxu1 %v665_v0 }
  0xe8   :  { %588 = vmatpush3.msra.mxu1 %v328_v48 }
  0xe9   :  { %589 = vmatprep.subr.mxu1 %v665_v0 }
  0xea   :  { %590 = vmatpush3.msra.mxu1 %v327_v49 }
  0xeb   :  { %591 = vmatprep.subr.mxu1 %v665_v0 }
  0xec   :  { %592 = vmatpush3.msra.mxu1 %v326_v50 }
  0xed   :  { %593 = vmatprep.subr.mxu1 %v665_v0 }
  0xee   :  { %594 = vmatpush3.msra.mxu1 %v325_v51 }
  0xef   :  { %595 = vmatprep.subr.mxu1 %v665_v0 }
  0xf0   :  { %596 = vmatpush3.msra.mxu1 %v324_v52 }
  0xf1   :  { %597 = vmatprep.subr.mxu1 %v665_v0 }
  0xf2   :  { %598 = vmatpush3.msra.mxu1 %v323_v53 }
  0xf3   :  { %599 = vmatprep.subr.mxu1 %v665_v0 }
  0xf4   :  { %600 = vmatpush3.msra.mxu1 %v322_v59 }
  0xf5   :  { %601 = vmatprep.subr.mxu1 %v665_v0 }
  0xf6   :  { %602 = vmatpush3.msra.mxu1 %v321_v60 }
  0xf7   :  { %603 = vmatprep.subr.mxu1 %v665_v0 }
  0xf8   :  { %604 = vmatpush3.msra.mxu1 %v320_v61 }
 0x199   :  { %v221_v55 = vpop.f32.mrf.mxu1 }
 0x19a   :  { %v222_v56 = vadd.f32 %v438_v54, %v221_v55 }
 0x19b   :  { %v537_v57 = vpop.f32.mrf.mxu1 }
 0x19c   :  { %v225_v58 = vmax.f32 %v222_v56, 0.0 }
 0x19e   :  { %571 = vmatmul.mubr.f32.vlgmr.msra.gmra.mxu0 %v225_v58 }
 0x25e   :  { %v315_v63 = vpop.f32.mrf.mxu0 }
 0x25f   :  { %v316_v1 = vadd.f32 %v439_v62, %v315_v63 }
 0x260   :  { %v572_v2 = vpop.f32.mrf.mxu0 }
 0x261   :  { %v319_v3 = vmax.f32 %v316_v1, 0.0 }
 0x263   :  { %606 = vmatmul.mubr.f32.vlgmr.msra.gmra.mxu1 %v319_v3 }
 0x323   :  { %v409_v5 = vpop.f32.mrf.mxu1 }
 0x324   :  { %v410_v0 = vadd.f32 %v440_v4, %v409_v5 }
 0x325   :  { %v607_v6 = vpop.f32.mrf.mxu1 }
 0x326   :  { %v441_v7 = vmul.f32 -1.442695, %v410_v0 }
 0x328   :  { %614 = vpow2.f32 %v441_v7 }
 0x335   :  { %v615_v8 = vpop.eup %614 }
 0x336   :  { %v416_v9 = vadd.f32 1.0, %v615_v8 }
 0x338   :  { %616 = vrcp.f32 %v416_v9 }
 0x345   :  { %v617_v10 = vpop.eup %616 }
 0x346   :  { %420 = vst.msk [vmem:[#allocation5] sm:$0xff] %vm419_vm2, %v617_v10 }
 0x347   :  { %649 = shalt.err (!%p646_p9)
}
 0x348   :  { %430 = dma.vmem_to_hbm [thread:$0]  %s428_s17, 128, %s908_s9, [#allocation4]  }
 0x349   :  { %660 = dma.done.wait [#allocation4], 128  }
 0x34a   :  { %661 = vsyncadd [#allocation4], 4294967168 }
 0x34b   :  { %434 = vsyncpa [#allocation3], 1 }
 0x34c   :  { %435 = vsyncpa [#allocation4], 1 }

</bundles_post_ra>
